<compile_context>
chip_gen: v6e
topology: v6e:2x2x1
jax: 0.10.0
libtpu: 0.0.40
codegen_flags: <defaults>
</compile_context>

<pallas_src>
import functools

import jax
import jax.numpy as jnp
from jax.experimental import pallas as pl
from jax.experimental.pallas import tpu as pltpu

ALPHA = 0.25
GAMMA = 2.0  # compile-time constant; focal weight is computed as d*d since gamma == 2


def _focal_loss_kernel(logits_ref, targets_ref, out_ref, acc_ref, *, n_rows):
    i = pl.program_id(0)
    n_blk = pl.num_programs(0)

    @pl.when(i == 0)
    def _init():
        acc_ref[0] = jnp.float32(0.0)   # running sum of focal weights  sum(w)
        acc_ref[1] = jnp.float32(0.0)   # running sum of CE terms       sum(ce)

    logits = logits_ref[...].astype(jnp.float32)   # (TN, C) -- f32 math even for bf16 inputs
    tgt = targets_ref[...]                          # (TN, 1) int32
    tn, c = logits.shape

    # Mask rows past the true batch size (last tile may be ragged / padded).
    row = i * tn + jax.lax.broadcasted_iota(jnp.int32, (tn, 1), 0)
    valid = row < n_rows                            # (TN, 1) bool
    logits = jnp.where(valid, logits, 0.0)          # keep padded-row math finite

    # --- numerically stable softmax pieces (shared between CE and p_t) ---
    m = jnp.max(logits, axis=1, keepdims=True)                       # (TN, 1)
    exp_sh = jnp.exp(logits - m)                                     # (TN, C)
    sum_exp = jnp.sum(exp_sh, axis=1, keepdims=True)                 # (TN, 1)

    # --- gather target class via one-hot mask (no dynamic gather on TPU) ---
    cls = jax.lax.broadcasted_iota(jnp.int32, (tn, c), 1)
    onehot = (cls == tgt).astype(jnp.float32)                        # (TN, C)
    tgt_logit = jnp.sum(logits * onehot, axis=1, keepdims=True)      # (TN, 1)
    p_exp = jnp.sum(exp_sh * onehot, axis=1, keepdims=True)          # (TN, 1) = exp(tgt - m)

    ce = jnp.log(sum_exp) + m - tgt_logit                            # (TN, 1) per-sample CE
    p_t = p_exp / sum_exp                                            # (TN, 1) target prob
    d = 1.0 - p_t
    w = ALPHA * (d * d)                                              # gamma == 2: no pow()

    vf = valid.astype(jnp.float32)
    acc_ref[0] += jnp.sum(w * vf)
    acc_ref[1] += jnp.sum(ce * vf)

    # mean over the (N, N) broadcast matrix == sum(w) * sum(ce) / N^2  (exact factorization)
    @pl.when(i == n_blk - 1)
    def _finalize():
        out_ref[0] = acc_ref[0] * acc_ref[1] * jnp.float32(1.0 / (n_rows * n_rows))


def focal_loss(logits, targets, *, block_rows=512):
    """logits: (N, C) float (f32 or bf16), targets: (N,) int class indices. Returns scalar f32."""
    n, c = logits.shape
    # Row tile: full array when small, else block_rows (multiple of 8) rows per grid step.
    # TODO(synk): shrink block_rows (~half) on v7x for very large C to stay under 32 MiB scoped VMEM.
    tn = n if n <= block_rows else block_rows
    grid = (pl.cdiv(n, tn),)

    targets_2d = targets.astype(jnp.int32).reshape(n, 1)
    kernel = functools.partial(_focal_loss_kernel, n_rows=n)

    out = pl.pallas_call(
        kernel,
        out_shape=jax.ShapeDtypeStruct((1,), jnp.float32),
        grid=grid,
        in_specs=[
            pl.BlockSpec((tn, c), lambda i: (i, 0)),   # logits tile (rows streamed, full C on lanes)
            pl.BlockSpec((tn, 1), lambda i: (i, 0)),   # matching target rows
        ],
        out_specs=pl.BlockSpec(memory_space=pltpu.MemorySpace.SMEM),  # scalar result via SMEM
        scratch_shapes=[pltpu.SMEM((2,), jnp.float32)],               # [sum_w, sum_ce] accumulators
        compiler_params=pltpu.CompilerParams(
            dimension_semantics=("arbitrary",),        # reduction axis: accumulate across tiles
        ),
    )(logits, targets_2d)
    return out[0]


def _focal_loss_ref(logits, targets):
    """Pure-JAX reference mirroring the PyTorch code (including the (N,N) broadcast quirk)."""
    logits = logits.astype(jnp.float32)
    probs = jax.nn.softmax(logits, axis=1)
    lse = jax.nn.logsumexp(logits, axis=1)
    tgt_logit = jnp.take_along_axis(logits, targets[:, None], axis=1)[:, 0]
    ce = lse - tgt_logit                                   # (N,)
    p_t = jnp.take_along_axis(probs, targets[:, None], axis=1)  # (N, 1)
    loss = ALPHA * (1.0 - p_t) ** GAMMA * ce               # (N,1)*(N,) -> (N,N)
    return jnp.mean(loss)


if __name__ == "__main__":
    key = jax.random.PRNGKey(0)
    k1, k2, k3, k4 = jax.random.split(key, 4)

    # Small single-tile case: batch=8 samples, 16 classes.
    N, C = 8, 16
    logits = jax.random.normal(k1, (N, C), dtype=jnp.float32)
    targets = jax.random.randint(k2, (N,), 0, C, dtype=jnp.int32)

    out = focal_loss(logits, targets)
    jax.block_until_ready(out)
    ref = _focal_loss_ref(logits, targets)
    assert out.shape == () and out.dtype == jnp.float32
    assert jnp.allclose(out, ref, rtol=1e-5, atol=1e-6), (out, ref)

    # Multi-tile case exercising the grid + SMEM accumulator path (3 blocks of 8 rows).
    N2, C2 = 24, 16
    logits2 = jax.random.normal(k3, (N2, C2), dtype=jnp.float32)
    targets2 = jax.random.randint(k4, (N2,), 0, C2, dtype=jnp.int32)

    out2 = focal_loss(logits2, targets2, block_rows=8)
    jax.block_until_ready(out2)
    ref2 = _focal_loss_ref(logits2, targets2)
    assert jnp.allclose(out2, ref2, rtol=1e-5, atol=1e-6), (out2, ref2)

    print("KERNEL_OK")
</pallas_src>

<mosaic_0001>
module attributes {stable_mosaic.version = 11 : i64} {
  func.func @_focal_loss_kernel(%arg0: i32, %arg1: memref<8x16xf32, #tpu.memory_space<vmem>>, %arg2: memref<8x1xi32, #tpu.memory_space<vmem>>, %arg3: memref<1xf32, #tpu.memory_space<smem>>, %arg4: memref<2xf32, #tpu.memory_space<smem>>) attributes {dimension_semantics = [#tpu.dimension_semantics<arbitrary>], iteration_bounds = array<i64: 1>, scalar_prefetch = 0 : i64, scratch_operands = 1 : i64, tpu.core_type = #tpu.core_type<tc>, window_params = [{transform_indices = @transform_0, window_bounds = array<i64: 8, 16>}, {transform_indices = @transform_1, window_bounds = array<i64: 8, 1>}, {transform_indices = @transform_2, window_bounds = array<i64: 1>}]} {
    %c0_i32 = arith.constant 0 : i32
    %0 = arith.cmpi eq, %arg0, %c0_i32 : i32
    %1 = arith.extui %0 : i1 to i32
    %c0_i32_0 = arith.constant 0 : i32
    %2 = arith.cmpi ne, %1, %c0_i32_0 : i32
    scf.if %2 {
      %cst_18 = arith.constant 0.000000e+00 : f32
      %c0_19 = arith.constant 0 : index
      %63 = memref.load %arg4[%c0_19] : memref<2xf32, #tpu.memory_space<smem>>
      memref.store %cst_18, %arg4[%c0_19] : memref<2xf32, #tpu.memory_space<smem>>
      %cst_20 = arith.constant 0.000000e+00 : f32
      %c1_21 = arith.constant 1 : index
      %64 = memref.load %arg4[%c1_21] : memref<2xf32, #tpu.memory_space<smem>>
      memref.store %cst_20, %arg4[%c1_21] : memref<2xf32, #tpu.memory_space<smem>>
    } else {
    }
    %c0 = arith.constant 0 : index
    %c0_1 = arith.constant 0 : index
    %3 = vector.load %arg1[%c0, %c0_1] : memref<8x16xf32, #tpu.memory_space<vmem>>, vector<8x16xf32>
    %c0_2 = arith.constant 0 : index
    %c0_3 = arith.constant 0 : index
    %4 = vector.load %arg2[%c0_2, %c0_3] : memref<8x1xi32, #tpu.memory_space<vmem>>, vector<8x1xi32>
    %c8_i32 = arith.constant 8 : i32
    %5 = arith.muli %arg0, %c8_i32 : i32
    %6 = tpu.iota {dimensions = array<i32: 0>} : vector<8x1xi32>
    %7 = vector.broadcast %5 : i32 to vector<8x1xi32>
    %8 = arith.addi %7, %6 : vector<8x1xi32>
    %c8_i32_4 = arith.constant 8 : i32
    %9 = vector.broadcast %c8_i32_4 : i32 to vector<8x1xi32>
    %10 = arith.cmpi slt, %8, %9 : vector<8x1xi32>
    %cst = arith.constant 0.000000e+00 : f32
    %11 = vector.shape_cast %10 : vector<8x1xi1> to vector<8x1xi1>
    %12 = vector.broadcast %11 : vector<8x1xi1> to vector<8x16xi1>
    %13 = vector.broadcast %cst : f32 to vector<8x16xf32>
    %14 = arith.select %12, %3, %13 : vector<8x16xi1>, vector<8x16xf32>
    %cst_5 = arith.constant dense<0xFF800000> : vector<8xf32>
    %15 = vector.multi_reduction <maximumf>, %14, %cst_5 [1] : vector<8x16xf32> to vector<8xf32>
    %16 = vector.shape_cast %15 : vector<8xf32> to vector<8x1xf32>
    %17 = vector.broadcast %16 : vector<8x1xf32> to vector<8x16xf32>
    %18 = arith.subf %14, %17 : vector<8x16xf32>
    %19 = math.exp %18 : vector<8x16xf32>
    %cst_6 = arith.constant dense<0.000000e+00> : vector<8xf32>
    %20 = vector.multi_reduction <add>, %19, %cst_6 [1] : vector<8x16xf32> to vector<8xf32>
    %21 = vector.shape_cast %20 : vector<8xf32> to vector<8x1xf32>
    %22 = tpu.iota {dimensions = array<i32: 1>} : vector<8x16xi32>
    %23 = vector.broadcast %4 : vector<8x1xi32> to vector<8x16xi32>
    %24 = arith.cmpi eq, %22, %23 : vector<8x16xi32>
    %25 = arith.extui %24 : vector<8x16xi1> to vector<8x16xi32>
    %26 = arith.sitofp %25 : vector<8x16xi32> to vector<8x16xf32>
    %27 = arith.mulf %14, %26 : vector<8x16xf32>
    %cst_7 = arith.constant dense<0.000000e+00> : vector<8xf32>
    %28 = vector.multi_reduction <add>, %27, %cst_7 [1] : vector<8x16xf32> to vector<8xf32>
    %29 = vector.shape_cast %28 : vector<8xf32> to vector<8x1xf32>
    %30 = arith.mulf %19, %26 : vector<8x16xf32>
    %cst_8 = arith.constant dense<0.000000e+00> : vector<8xf32>
    %31 = vector.multi_reduction <add>, %30, %cst_8 [1] : vector<8x16xf32> to vector<8xf32>
    %32 = vector.shape_cast %31 : vector<8xf32> to vector<8x1xf32>
    %33 = math.log %21 : vector<8x1xf32>
    %34 = arith.addf %33, %16 : vector<8x1xf32>
    %35 = arith.subf %34, %29 : vector<8x1xf32>
    %36 = arith.divf %32, %21 : vector<8x1xf32>
    %cst_9 = arith.constant 1.000000e+00 : f32
    %37 = vector.broadcast %cst_9 : f32 to vector<8x1xf32>
    %38 = arith.subf %37, %36 : vector<8x1xf32>
    %39 = arith.mulf %38, %38 : vector<8x1xf32>
    %cst_10 = arith.constant 2.500000e-01 : f32
    %40 = vector.broadcast %cst_10 : f32 to vector<8x1xf32>
    %41 = arith.mulf %40, %39 : vector<8x1xf32>
    %42 = arith.extui %10 : vector<8x1xi1> to vector<8x1xi32>
    %43 = arith.sitofp %42 : vector<8x1xi32> to vector<8x1xf32>
    %c0_11 = arith.constant 0 : index
    %44 = memref.load %arg4[%c0_11] : memref<2xf32, #tpu.memory_space<smem>>
    %45 = arith.mulf %41, %43 : vector<8x1xf32>
    %46 = vector.shape_cast %45 : vector<8x1xf32> to vector<1x8x1xf32>
    %cst_12 = arith.constant dense<0.000000e+00> : vector<1xf32>
    %47 = vector.multi_reduction <add>, %46, %cst_12 [1, 2] : vector<1x8x1xf32> to vector<1xf32>
    %48 = vector.shape_cast %47 : vector<1xf32> to vector<1x1x1xf32>
    %49 = vector.extract %48[0, 0, 0] : f32 from vector<1x1x1xf32>
    %50 = arith.addf %44, %49 : f32
    %c0_13 = arith.constant 0 : index
    %51 = memref.load %arg4[%c0_13] : memref<2xf32, #tpu.memory_space<smem>>
    memref.store %50, %arg4[%c0_13] : memref<2xf32, #tpu.memory_space<smem>>
    %c1 = arith.constant 1 : index
    %52 = memref.load %arg4[%c1] : memref<2xf32, #tpu.memory_space<smem>>
    %53 = arith.mulf %35, %43 : vector<8x1xf32>
    %54 = vector.shape_cast %53 : vector<8x1xf32> to vector<1x8x1xf32>
    %cst_14 = arith.constant dense<0.000000e+00> : vector<1xf32>
    %55 = vector.multi_reduction <add>, %54, %cst_14 [1, 2] : vector<1x8x1xf32> to vector<1xf32>
    %56 = vector.shape_cast %55 : vector<1xf32> to vector<1x1x1xf32>
    %57 = vector.extract %56[0, 0, 0] : f32 from vector<1x1x1xf32>
    %58 = arith.addf %52, %57 : f32
    %c1_15 = arith.constant 1 : index
    %59 = memref.load %arg4[%c1_15] : memref<2xf32, #tpu.memory_space<smem>>
    memref.store %58, %arg4[%c1_15] : memref<2xf32, #tpu.memory_space<smem>>
    %c0_i32_16 = arith.constant 0 : i32
    %60 = arith.cmpi eq, %arg0, %c0_i32_16 : i32
    %61 = arith.extui %60 : i1 to i32
    %c0_i32_17 = arith.constant 0 : i32
    %62 = arith.cmpi ne, %61, %c0_i32_17 : i32
    scf.if %62 {
      %c0_18 = arith.constant 0 : index
      %63 = memref.load %arg4[%c0_18] : memref<2xf32, #tpu.memory_space<smem>>
      %c1_19 = arith.constant 1 : index
      %64 = memref.load %arg4[%c1_19] : memref<2xf32, #tpu.memory_space<smem>>
      %65 = arith.mulf %63, %64 : f32
      %cst_20 = arith.constant 1.562500e-02 : f32
      %66 = arith.mulf %65, %cst_20 : f32
      %c0_21 = arith.constant 0 : index
      %67 = memref.load %arg3[%c0_21] : memref<1xf32, #tpu.memory_space<smem>>
      memref.store %66, %arg3[%c0_21] : memref<1xf32, #tpu.memory_space<smem>>
    } else {
    }
    return
  }
  func.func @transform_0(%arg0: i32) -> (i32, i32) {
    %c0_i32 = arith.constant 0 : i32
    %c0_i32_0 = arith.constant 0 : i32
    return %arg0, %c0_i32 : i32, i32
  }
  func.func @transform_1(%arg0: i32) -> (i32, i32) {
    %c0_i32 = arith.constant 0 : i32
    %c0_i32_0 = arith.constant 0 : i32
    return %arg0, %c0_i32 : i32, i32
  }
  func.func @transform_2(%arg0: i32) -> i32 {
    %c0_i32 = arith.constant 0 : i32
    %c0_i32_0 = arith.constant 0 : i32
    return %c0_i32 : i32
  }
}

</mosaic_0001>

<bundles_post_ra>
// kernel: tpu_custom_call.1
= control target key start
LH: loop header
LB: loop body
LE: loop exit
PB: predicated region body
PF: predicated region fallthrough
CT: control target
= control target key end

     0   :  { %vm31_vm0 = vcmask 130048   ;;  %s178_s0 = inlined_call_operand.vmem [shape: f32[8,16], index: 0, kind: input, shape index: {}]   ;;  %s179_s1 = inlined_call_operand.vmem [shape: s32[8,1], index: 1, kind: input, shape index: {}]   ;;  %s180_s2 = inlined_call_operand.hbm [shape: f32[1], index: 2, kind: output, shape index: {}]  }
   0x1   :  { %v20_v0 = vld [vmem:[%s178_s0] sm:$0xff] }
   0x2   :  { %7 = vsyncpa [#allocation4], 0  ;;  %v32_v1 = vsel %vm31_vm0, %v20_v0, -inf  ;;  %v147_v2 = vmov 0   ;;  %v21_v3 = vld [vmem:[%s179_s1] sm:$0xff]  ;;  %v41_v7 = vlaneseq  ;;  %v148_v10 = vmov 0.0  }
   0x3   :  { %130 = vset.pattern.permute.xlu0 %v147_v2  ;;  %vm69_vm2 = vcmask 7168   ;;  %s149_s15 = smov [#allocation3]  }
   0x4   :  { %33 = vmax.xlane.f32.xlu0 %v32_v1  ;;  %v42_v8 = vand.u32 127, %v41_v7 }
  0x1a   :  { %44 = vperm.xlu0 %130, %v21_v3  }
  0x8d   :  { %v34_v4 = vpop.xlane.xlu0 %33 }
  0x8e   :  { %v35_v5 = vsub.f32 %v20_v0, %v34_v4 }
  0x90   :  { %v36_v6 = vmul.f32 1.442695, %v35_v5 }
  0x92   :  { %131 = vpow2.f32 %v36_v6 }
  0x95   :  { %v45_v9 = vpop.permute.xlu0 %44 }
  0x96   :  { %vm46_vm1 = vcmp.eq.s32.totalorder %v42_v8, %v45_v9 }
  0x97   :  { %v120_v11 = vsel %vm46_vm1, 1.0, %v148_v10 }
  0x98   :  { %v49_v15 = vmul.f32 %v120_v11, %v20_v0 }
  0x9a   :  { %v50_v17 = vsel %vm31_vm0, %v49_v15, 0.0 }
  0x9f   :  { %v132_v12 = vpop.eup %131 }
  0xa0   :  { %v38_v13 = vsel %vm31_vm0, %v132_v12, 0.0  ;;  %v53_v14 = vmul.f32 %v132_v12, %v120_v11 }
  0xa1   :  { %39 = vadd.xlane.f32.xlu1 %v38_v13 }
  0xa2   :  { %v54_v16 = vsel %vm31_vm0, %v53_v14, 0.0 }
  0xa5   :  { %55 = vadd.xlane.f32.xlu1 %v54_v16 }
  0xa9   :  { %51 = vadd.xlane.f32.xlu1 %v50_v17 }
 0x12a   :  { %v40_v18 = vpop.xlane.xlu1 %39 }
 0x12b   :  { %133 = vlog2.f32 %v40_v18 }
 0x12c   :  { %135 = vrcp.f32 %v40_v18 }
 0x12e   :  { %v56_v21 = vpop.xlane.xlu1 %55 }
 0x132   :  { %v52_v28 = vpop.xlane.xlu1 %51 }
 0x138   :  { %v134_v19 = vpop.eup %133 }
 0x139   :  { %v136_v20 = vpop.eup %135  ;;  %v58_v23 = vmul.f32 0.6931472, %v134_v19 }
 0x13a   :  { %v62_v22 = vmul.f32 %v136_v20, %v56_v21 }
 0x13b   :  { %v59_v26 = vadd.f32 %v58_v23, %v34_v4 }
 0x13c   :  { %v63_v24 = vsub.f32 1.0, %v62_v22 }
 0x13d   :  { %v60_v29 = vsub.f32 %v59_v26, %v52_v28 }
 0x13e   :  { %v64_v25 = vmul.f32 %v63_v24, %v63_v24 }
 0x13f   :  { %v85_v31 = vsel %vm69_vm2, %v60_v29, 0.0 }
 0x140   :  { %v65_v27 = vmul.f32 0.25, %v64_v25 }
 0x142   :  { %v70_v30 = vsel %vm69_vm2, %v65_v27, 0.0 }
 0x143   :  { %71 = vadd.xlane.f32.xlu1 %v70_v30 }
 0x147   :  { %86 = vadd.xlane.f32.xlu1 %v85_v31 }
 0x1cc   :  { %v72_v32 = vpop.xlane.xlu1 %71 }
 0x1cd   :  { %v73_v33 = vrot.slane %v72_v32, 4 }
 0x1cf   :  { %v74_v34 = vadd.f32 %v73_v33, %v72_v32 }
 0x1d0   :  { %v87_v35 = vpop.xlane.xlu1 %86 }
 0x1d1   :  { %v75_v36 = vrot.slane %v74_v34, 2  ;;  %v88_v37 = vrot.slane %v87_v35, 4 }
 0x1d3   :  { %v89_v38 = vadd.f32 %v88_v37, %v87_v35  ;;  %v76_v39 = vadd.f32 %v75_v36, %v74_v34 }
 0x1d5   :  { %v90_v40 = vrot.slane %v89_v38, 2  ;;  %v77_v41 = vrot.slane %v76_v39, 1 }
 0x1d7   :  { %v91_v42 = vadd.f32 %v90_v40, %v89_v38  ;;  %v78_v43 = vadd.f32 %v77_v41, %v76_v39 }
 0x1d9   :  { %123 = vpush %v78_v43  ;;  %v92_v44 = vrot.slane %v91_v42, 1 }
 0x1db   :  { %v93_v45 = vadd.f32 %v92_v44, %v91_v42 }
 0x1dd   :  { %125 = vpush %v93_v45 }
 0x20a   :  { %s124_s0 = spop %123 }
 0x20e   :  { %s126_s1 = spop %125 }
 0x20f   :  { %s103_s13 = smul.f32 %s126_s1, %s124_s0 }
 0x211   :  { %s104_s14 = smul.f32 0.015625, %s103_s13 }
 0x213   :  { %106 = sst [smem:[#allocation3]] %s104_s14 }
 0x214   :  { %114 = dma.smem_to_hbm %s149_s15, 16, %s180_s2, [#allocation4]  }
 0x215   :  { %145 = dma.done.wait [#allocation4], 16  }
 0x216   :  { %146 = vsyncadd [#allocation4], 4294967280 }
 0x217   :  { %118 = sfence }
 0x218   :  { %119 = vsyncpa [#allocation4], 1 }

</bundles_post_ra>
